<compile_context>
chip_gen: v6e
topology: v6e:2x2x1
jax: 0.10.0
libtpu: 0.0.40
codegen_flags: <defaults>
</compile_context>

<pallas_src>
import functools

import jax
import jax.numpy as jnp
from jax.experimental import pallas as pl
from jax.experimental.pallas import tpu as pltpu

# Scoped-VMEM budget.  Worst-case tile set (tm=512, tk=1024, tn=2048) is
# ~19 MiB, so 48 MiB leaves double-buffering headroom on v7x (64 MiB physical)
# while still exceeding the 32 MiB scoped default on v5e/v6e.
VMEM_LIMIT = 48 * 1024 * 1024


def _round_up(x, m):
    return ((x + m - 1) // m) * m


# ----------------------------------------------------------------------------
# Pallas kernels
# ----------------------------------------------------------------------------
def _matmul_stats_kernel(a_ref, b_ref, o_ref, sum_ref, sq_ref, acc_ref):
    """bf16 MXU GEMM, f32 accumulation in VMEM scratch.

    On the last K step: cast the accumulator to the (bf16) output tile and
    emit per-channel partial sum / sum-of-squares for the fused BN stats
    (broadcast over the 8-row stats tile; row 0 of each tile is consumed).
    """
    @pl.when(pl.program_id(2) == 0)
    def _():
        acc_ref[...] = jnp.zeros_like(acc_ref)

    acc_ref[...] += jnp.dot(a_ref[...], b_ref[...],
                            preferred_element_type=jnp.float32)

    @pl.when(pl.program_id(2) == pl.num_programs(2) - 1)
    def _():
        acc = acc_ref[...]
        o_ref[...] = acc.astype(o_ref.dtype)
        s = jnp.sum(acc, axis=0, keepdims=True)          # [1, tn]
        q = jnp.sum(acc * acc, axis=0, keepdims=True)    # [1, tn]
        sum_ref[...] = jnp.broadcast_to(s, sum_ref.shape)
        sq_ref[...] = jnp.broadcast_to(q, sq_ref.shape)


def _bn_apply_kernel(x_ref, scale_ref, shift_ref, o_ref, *, relu):
    y = x_ref[...].astype(jnp.float32) * scale_ref[...] + shift_ref[...]
    if relu:
        y = jnp.maximum(y, 0.0)
    o_ref[...] = y.astype(o_ref.dtype)


def _bn_apply_res_kernel(x_ref, scale_ref, shift_ref, res_ref, o_ref):
    # BN (no relu) + residual add + ReLU, fused in one lane-dense pass.
    y = (x_ref[...].astype(jnp.float32) * scale_ref[...] + shift_ref[...]
         + res_ref[...].astype(jnp.float32))
    o_ref[...] = jnp.maximum(y, 0.0).astype(o_ref.dtype)


# ----------------------------------------------------------------------------
# Pallas wrappers
# ----------------------------------------------------------------------------
def pallas_conv_gemm(a, b, out_dtype=jnp.bfloat16, tm_max=512, tk_max=1024):
    """a: [M, K], b: [K, N] -> (y [Mp, Np] out_dtype, col_sum [Np] f32,
    col_sq [Np] f32, tm).

    Weights are VMEM-resident (tn = full padded N), activations stream once.
    Padded rows/channels are exact zeros, so the column sums are exact.
    """
    a = a.astype(jnp.bfloat16)
    b = b.astype(jnp.bfloat16)
    M, K = a.shape
    K2, N = b.shape
    assert K == K2

    tm = min(tm_max, _round_up(M, 16))        # 16-row alignment (bf16 packing)
    Np = _round_up(N, 128)
    tn = Np                                   # resident weight: full Cout
    Ka = _round_up(K, 128)
    if Ka <= tk_max:
        tk = Ka
    else:
        steps = -(-Ka // tk_max)
        tk = _round_up(-(-Ka // steps), 128)  # minimize K padding waste
    Mp = _round_up(M, tm)
    Kp = _round_up(Ka, tk)

    if (Mp, Kp) != (M, K):
        a = jnp.pad(a, ((0, Mp - M), (0, Kp - K)))
    if (Kp, Np) != (K, N):
        b = jnp.pad(b, ((0, Kp - K), (0, Np - N)))

    n_i = Mp // tm
    y, psum, psq = pl.pallas_call(
        _matmul_stats_kernel,
        out_shape=(jax.ShapeDtypeStruct((Mp, Np), out_dtype),
                   jax.ShapeDtypeStruct((8 * n_i, Np), jnp.float32),
                   jax.ShapeDtypeStruct((8 * n_i, Np), jnp.float32)),
        grid_spec=pltpu.PrefetchScalarGridSpec(
            num_scalar_prefetch=0,
            grid=(n_i, Np // tn, Kp // tk),
            in_specs=[
                pl.BlockSpec((tm, tk), lambda i, j, k: (i, k)),
                pl.BlockSpec((tk, tn), lambda i, j, k: (k, j)),
            ],
            out_specs=(pl.BlockSpec((tm, tn), lambda i, j, k: (i, j)),
                       pl.BlockSpec((8, tn), lambda i, j, k: (i, j)),
                       pl.BlockSpec((8, tn), lambda i, j, k: (i, j))),
            scratch_shapes=[pltpu.VMEM((tm, tn), jnp.float32)],
        ),
        compiler_params=pltpu.CompilerParams(
            dimension_semantics=("parallel", "parallel", "arbitrary"),
            vmem_limit_bytes=VMEM_LIMIT),
    )(a, b)

    # Tiny cross-M-tile reduction (row 0 of each 8-row partial tile).
    col_sum = jnp.sum(psum[0::8], axis=0)
    col_sq = jnp.sum(psq[0::8], axis=0)
    return y, col_sum, col_sq, tm


# ----------------------------------------------------------------------------
# Plain-JAX glue (layout plumbing only)
# ----------------------------------------------------------------------------
def im2col(x, kh, kw, stride, pad):
    """x: [N, H, W, C] -> patches [N*OH*OW, kh*kw*C] (order: kh, kw, cin)."""
    # TODO(synk): lower 3x3 / 7x7 convs as shifted-window matmuls read
    # directly from the padded NHWC activation (fold kh*kw into the K grid)
    # to avoid the kh*kw x HBM blow-up of materialized im2col.
    N, H, W, C = x.shape
    xp = jnp.pad(x, ((0, 0), (pad, pad), (pad, pad), (0, 0)))
    OH = (H + 2 * pad - kh) // stride + 1
    OW = (W + 2 * pad - kw) // stride + 1
    cols = []
    for i in range(kh):
        for j in range(kw):
            cols.append(
                xp[:, i:i + stride * OH:stride, j:j + stride * OW:stride, :])
    patches = jnp.concatenate(cols, axis=-1)  # [N, OH, OW, kh*kw*C]
    return patches.reshape(N * OH * OW, kh * kw * C), (N, OH, OW)


def maxpool2d(x, k=3, stride=2, pad=1):
    """PyTorch-style max pool (padding ignored via -inf init), single pass."""
    init = jnp.array(-jnp.inf, dtype=x.dtype)
    return jax.lax.reduce_window(
        x, init, jax.lax.max,
        window_dimensions=(1, k, k, 1),
        window_strides=(1, stride, stride, 1),
        padding=((0, 0), (pad, pad), (pad, pad), (0, 0)))


# ----------------------------------------------------------------------------
# ResNet-50 building blocks
# ----------------------------------------------------------------------------
def conv2d_as_gemm(x, w, stride, pad):
    """NHWC conv (no bias) -> (A [M, K], B [K, Cout], output shape info)."""
    kh, kw, cin, cout = w.shape
    if kh == 1 and kw == 1 and pad == 0:
        if stride != 1:
            x = x[:, ::stride, ::stride, :]
        N, OH, OW, _ = x.shape
        A = x.reshape(N * OH * OW, cin)
    else:
        A, (N, OH, OW) = im2col(x, kh, kw, stride, pad)
    return A, w.reshape(kh * kw * cin, cout), (N, OH, OW, cout)


def conv_bn(x, w, gamma, beta, stride, pad, *, relu, residual=None, eps=1e-5):
    """Conv (GEMM with fused BN stats) + training-mode BN (+residual) (+ReLU).

    The conv output stays channel-padded (multiple of 128) and row-padded
    through the BN apply pass (lane-dense stores); a single slice at the NHWC
    reshape boundary recovers the real [N, OH, OW, cout] tensor.
    """
    A, B, (N, OH, OW, cout) = conv2d_as_gemm(x, w, stride, pad)
    M = A.shape[0]
    y, col_sum, col_sq, tm = pallas_conv_gemm(A, B)
    Mp, Np = y.shape

    # Tiny [Np] scalar plumbing (padded rows/channels are exact zeros).
    mean = col_sum / M
    var = jnp.maximum(col_sq / M - mean * mean, 0.0)   # biased (training) var
    gamma_p = jnp.pad(gamma.astype(jnp.float32), (0, Np - cout))
    beta_p = jnp.pad(beta.astype(jnp.float32), (0, Np - cout))
    scale = gamma_p * jax.lax.rsqrt(var + eps)
    shift = beta_p - mean * scale
    scale2 = scale.reshape(1, Np)
    shift2 = shift.reshape(1, Np)

    inputs = [y, scale2, shift2]
    in_specs = [pl.BlockSpec((tm, Np), lambda i: (i, 0)),
                pl.BlockSpec((1, Np), lambda i: (0, 0)),
                pl.BlockSpec((1, Np), lambda i: (0, 0))]
    if residual is not None:
        res2d = residual.reshape(M, cout).astype(jnp.bfloat16)
        if Mp != M or Np != cout:
            res2d = jnp.pad(res2d, ((0, Mp - M), (0, Np - cout)))
        inputs.append(res2d)
        in_specs.append(pl.BlockSpec((tm, Np), lambda i: (i, 0)))
        kernel = _bn_apply_res_kernel
    else:
        kernel = functools.partial(_bn_apply_kernel, relu=relu)

    out = pl.pallas_call(
        kernel,
        out_shape=jax.ShapeDtypeStruct((Mp, Np), jnp.bfloat16),
        grid_spec=pltpu.PrefetchScalarGridSpec(
            num_scalar_prefetch=0,
            grid=(Mp // tm,),
            in_specs=in_specs,
            out_specs=pl.BlockSpec((tm, Np), lambda i: (i, 0)),
        ),
        compiler_params=pltpu.CompilerParams(
            dimension_semantics=("parallel",),
            vmem_limit_bytes=VMEM_LIMIT),
    )(*inputs)

    if Mp != M or Np != cout:
        out = out[:M, :cout]
    return out.reshape(N, OH, OW, cout)


def bottleneck(x, p):
    stride = p["stride"]
    if "ds_w" in p:
        identity = conv_bn(x, p["ds_w"], p["ds_g"], p["ds_b"], stride, 0,
                           relu=False)
    else:
        identity = x
    out = conv_bn(x, p["conv1_w"], p["bn1_g"], p["bn1_b"], 1, 0, relu=True)
    out = conv_bn(out, p["conv2_w"], p["bn2_g"], p["bn2_b"], stride, 1,
                  relu=True)
    # conv3 GEMM (fused stats) -> BN + residual add + ReLU in one pass.
    out = conv_bn(out, p["conv3_w"], p["bn3_g"], p["bn3_b"], 1, 0,
                  relu=True, residual=identity)
    return out


def resnet50_forward(params, x_nchw):
    # NCHW (PyTorch) -> NHWC bf16 (internal)
    x = jnp.transpose(x_nchw, (0, 2, 3, 1)).astype(jnp.bfloat16)
    x = conv_bn(x, params["conv1_w"], params["bn1_g"], params["bn1_b"],
                stride=2, pad=3, relu=True)
    x = maxpool2d(x, k=3, stride=2, pad=1)
    for blocks in params["layers"]:
        for p in blocks:
            x = bottleneck(x, p)
    pooled = jnp.mean(x, axis=(1, 2))                 # adaptive avg pool -> [N, 2048]
    nb = pooled.shape[0]
    nc = params["fc_b"].shape[0]
    y, _, _, _ = pallas_conv_gemm(pooled, params["fc_w"],
                                  out_dtype=jnp.float32)
    logits = y[:nb, :nc] + params["fc_b"]
    return logits


# ----------------------------------------------------------------------------
# Deterministic parameter construction (resnet50 shapes, synthetic values)
# ----------------------------------------------------------------------------
def _conv_w(key, kh, kw, cin, cout):
    std = (2.0 / (kh * kw * cin)) ** 0.5
    w = jax.random.normal(key, (kh, kw, cin, cout), jnp.float32) * std
    return w.astype(jnp.bfloat16)        # weights stored bf16 for the MXU


def init_resnet50_params(key, in_channels, out_classes):
    keys = iter(jax.random.split(key, 128))
    params = {
        "conv1_w": _conv_w(next(keys), 7, 7, in_channels, 64),
        "bn1_g": jnp.ones((64,), jnp.float32),
        "bn1_b": jnp.zeros((64,), jnp.float32),
    }
    layer_cfg = [(64, 3, 1), (128, 4, 2), (256, 6, 2), (512, 3, 2)]
    cin = 64
    layers = []
    for planes, nblocks, stride in layer_cfg:
        blocks = []
        for b in range(nblocks):
            s = stride if b == 0 else 1
            p = {
                "stride": s,
                "conv1_w": _conv_w(next(keys), 1, 1, cin, planes),
                "bn1_g": jnp.ones((planes,), jnp.float32),
                "bn1_b": jnp.zeros((planes,), jnp.float32),
                "conv2_w": _conv_w(next(keys), 3, 3, planes, planes),
                "bn2_g": jnp.ones((planes,), jnp.float32),
                "bn2_b": jnp.zeros((planes,), jnp.float32),
                "conv3_w": _conv_w(next(keys), 1, 1, planes, planes * 4),
                "bn3_g": jnp.ones((planes * 4,), jnp.float32),
                "bn3_b": jnp.zeros((planes * 4,), jnp.float32),
            }
            if s != 1 or cin != planes * 4:
                p["ds_w"] = _conv_w(next(keys), 1, 1, cin, planes * 4)
                p["ds_g"] = jnp.ones((planes * 4,), jnp.float32)
                p["ds_b"] = jnp.zeros((planes * 4,), jnp.float32)
            blocks.append(p)
            cin = planes * 4
        layers.append(blocks)
    params["layers"] = layers
    params["fc_w"] = (jax.random.normal(next(keys), (2048, out_classes),
                                        jnp.float32)
                      * (1.0 / 2048 ** 0.5)).astype(jnp.bfloat16)
    params["fc_b"] = jnp.zeros((out_classes,), jnp.float32)
    return params


# ----------------------------------------------------------------------------
if __name__ == "__main__":
    in_channels, out_classes = 4, 10
    key = jax.random.PRNGKey(0)
    k_param, k_in = jax.random.split(key)
    params = init_resnet50_params(k_param, in_channels, out_classes)

    # PyTorch NCHW input: [batch=2, in_channels=4, 16, 16]
    x = jax.random.normal(k_in, (2, in_channels, 16, 16), jnp.float32)

    logits = resnet50_forward(params, x)
    logits = jax.block_until_ready(logits)
    assert logits.shape == (2, out_classes)
    assert bool(jnp.all(jnp.isfinite(logits)))
    print("KERNEL_OK")
</pallas_src>

<mosaic_0001>
module attributes {stable_mosaic.version = 11 : i64} {
  func.func @_matmul_stats_kernel(%arg0: i32, %arg1: i32, %arg2: i32, %arg3: memref<128x256xbf16, #tpu.memory_space<vmem>>, %arg4: memref<256x128xbf16, #tpu.memory_space<vmem>>, %arg5: memref<128x128xbf16, #tpu.memory_space<vmem>>, %arg6: memref<8x128xf32, #tpu.memory_space<vmem>>, %arg7: memref<8x128xf32, #tpu.memory_space<vmem>>, %arg8: memref<128x128xf32, #tpu.memory_space<vmem>>) attributes {dimension_semantics = [#tpu.dimension_semantics<parallel>, #tpu.dimension_semantics<parallel>, #tpu.dimension_semantics<arbitrary>], iteration_bounds = array<i64: 1, 1, 1>, scalar_prefetch = 0 : i64, scratch_operands = 1 : i64, tpu.core_type = #tpu.core_type<tc>, window_params = [{transform_indices = @transform_0, window_bounds = array<i64: 128, 256>}, {transform_indices = @transform_1, window_bounds = array<i64: 256, 128>}, {transform_indices = @transform_2, window_bounds = array<i64: 128, 128>}, {transform_indices = @transform_3, window_bounds = array<i64: 8, 128>}, {transform_indices = @transform_4, window_bounds = array<i64: 8, 128>}]} {
    %c0_i32 = arith.constant 0 : i32
    %0 = arith.cmpi eq, %arg2, %c0_i32 : i32
    %1 = arith.extui %0 : i1 to i32
    %c0_i32_0 = arith.constant 0 : i32
    %2 = arith.cmpi ne, %1, %c0_i32_0 : i32
    scf.if %2 {
      %cst_10 = arith.constant 0.000000e+00 : f32
      %12 = vector.broadcast %cst_10 : f32 to vector<128x128xf32>
      %c0_11 = arith.constant 0 : index
      %c0_12 = arith.constant 0 : index
      %13 = vector.load %arg8[%c0_11, %c0_12] : memref<128x128xf32, #tpu.memory_space<vmem>>, vector<128x128xf32>
      tpu.vector_store %arg8[%c0_11, %c0_12], %12 {strides = array<i32>} : memref<128x128xf32, #tpu.memory_space<vmem>>, vector<128x128xf32>,
    } else {
    }
    %c0 = arith.constant 0 : index
    %c0_1 = arith.constant 0 : index
    %3 = vector.load %arg8[%c0, %c0_1] : memref<128x128xf32, #tpu.memory_space<vmem>>, vector<128x128xf32>
    %c0_2 = arith.constant 0 : index
    %c0_3 = arith.constant 0 : index
    %4 = vector.load %arg3[%c0_2, %c0_3] : memref<128x256xbf16, #tpu.memory_space<vmem>>, vector<128x256xbf16>
    %c0_4 = arith.constant 0 : index
    %c0_5 = arith.constant 0 : index
    %5 = vector.load %arg4[%c0_4, %c0_5] : memref<256x128xbf16, #tpu.memory_space<vmem>>, vector<256x128xbf16>
    %cst = arith.constant dense<0.000000e+00> : vector<128x128xf32>
    %6 = tpu.matmul %4, %5, %cst {dimension_numbers = #tpu.dot_dimension_numbers<[1], [0], [0], [1], [0, 0, 1, 1], [], []>} : vector<128x256xbf16>, vector<256x128xbf16>, vector<128x128xf32> -> vector<128x128xf32>
    %7 = arith.addf %3, %6 : vector<128x128xf32>
    %c0_6 = arith.constant 0 : index
    %c0_7 = arith.constant 0 : index
    %8 = vector.load %arg8[%c0_6, %c0_7] : memref<128x128xf32, #tpu.memory_space<vmem>>, vector<128x128xf32>
    tpu.vector_store %arg8[%c0_6, %c0_7], %7 {strides = array<i32>} : memref<128x128xf32, #tpu.memory_space<vmem>>, vector<128x128xf32>,
    %c0_i32_8 = arith.constant 0 : i32
    %9 = arith.cmpi eq, %arg2, %c0_i32_8 : i32
    %10 = arith.extui %9 : i1 to i32
    %c0_i32_9 = arith.constant 0 : i32
    %11 = arith.cmpi ne, %10, %c0_i32_9 : i32
    scf.if %11 {
      %c0_10 = arith.constant 0 : index
      %c0_11 = arith.constant 0 : index
      %12 = vector.load %arg8[%c0_10, %c0_11] : memref<128x128xf32, #tpu.memory_space<vmem>>, vector<128x128xf32>
      %13 = arith.truncf %12 : vector<128x128xf32> to vector<128x128xbf16>
      %c0_12 = arith.constant 0 : index
      %c0_13 = arith.constant 0 : index
      %14 = vector.load %arg5[%c0_12, %c0_13] : memref<128x128xbf16, #tpu.memory_space<vmem>>, vector<128x128xbf16>
      tpu.vector_store %arg5[%c0_12, %c0_13], %13 {strides = array<i32>} : memref<128x128xbf16, #tpu.memory_space<vmem>>, vector<128x128xbf16>,
      %cst_14 = arith.constant dense<0.000000e+00> : vector<128xf32>
      %15 = vector.multi_reduction <add>, %12, %cst_14 [0] : vector<128x128xf32> to vector<128xf32>
      %16 = vector.shape_cast %15 : vector<128xf32> to vector<1x128xf32>
      %17 = arith.mulf %12, %12 : vector<128x128xf32>
      %cst_15 = arith.constant dense<0.000000e+00> : vector<128xf32>
      %18 = vector.multi_reduction <add>, %17, %cst_15 [0] : vector<128x128xf32> to vector<128xf32>
      %19 = vector.shape_cast %18 : vector<128xf32> to vector<1x128xf32>
      %20 = vector.shape_cast %16 : vector<1x128xf32> to vector<1x128xf32>
      %21 = vector.broadcast %20 : vector<1x128xf32> to vector<8x128xf32>
      %c0_16 = arith.constant 0 : index
      %c0_17 = arith.constant 0 : index
      %22 = vector.load %arg6[%c0_16, %c0_17] : memref<8x128xf32, #tpu.memory_space<vmem>>, vector<8x128xf32>
      tpu.vector_store %arg6[%c0_16, %c0_17], %21 {strides = array<i32>} : memref<8x128xf32, #tpu.memory_space<vmem>>, vector<8x128xf32>,
      %23 = vector.shape_cast %19 : vector<1x128xf32> to vector<1x128xf32>
      %24 = vector.broadcast %23 : vector<1x128xf32> to vector<8x128xf32>
      %c0_18 = arith.constant 0 : index
      %c0_19 = arith.constant 0 : index
      %25 = vector.load %arg7[%c0_18, %c0_19] : memref<8x128xf32, #tpu.memory_space<vmem>>, vector<8x128xf32>
      tpu.vector_store %arg7[%c0_18, %c0_19], %24 {strides = array<i32>} : memref<8x128xf32, #tpu.memory_space<vmem>>, vector<8x128xf32>,
    } else {
    }
    return
  }
  func.func @transform_0(%arg0: i32, %arg1: i32, %arg2: i32) -> (i32, i32) {
    %c0_i32 = arith.constant 0 : i32
    return %arg0, %arg2 : i32, i32
  }
  func.func @transform_1(%arg0: i32, %arg1: i32, %arg2: i32) -> (i32, i32) {
    %c0_i32 = arith.constant 0 : i32
    return %arg2, %arg1 : i32, i32
  }
  func.func @transform_2(%arg0: i32, %arg1: i32, %arg2: i32) -> (i32, i32) {
    %c0_i32 = arith.constant 0 : i32
    return %arg0, %arg1 : i32, i32
  }
  func.func @transform_3(%arg0: i32, %arg1: i32, %arg2: i32) -> (i32, i32) {
    %c0_i32 = arith.constant 0 : i32
    return %arg0, %arg1 : i32, i32
  }
  func.func @transform_4(%arg0: i32, %arg1: i32, %arg2: i32) -> (i32, i32) {
    %c0_i32 = arith.constant 0 : i32
    return %arg0, %arg1 : i32, i32
  }
}

</mosaic_0001>

<bundles_post_ra>
// kernel: tpu_custom_call.1
= control target key start
LH: loop header
LB: loop body
LE: loop exit
PB: predicated region body
PF: predicated region fallthrough
CT: control target
= control target key end

     0   :  { %10 = vsyncpa [#allocation4], 0  ;;  %s1071_s0 = inlined_call_operand.hbm [shape: bf16[128,256], index: 0, kind: input, shape index: {}]   ;;  %s1072_s1 = inlined_call_operand.hbm [shape: bf16[256,128], index: 1, kind: input, shape index: {}]   ;;  %s1073_s2 = inlined_call_operand.hbm [shape: bf16[128,128], index: 2, kind: output, shape index: {0}]   ;;  %s1074_s3 = inlined_call_operand.hbm [shape: f32[8,128], index: 3, kind: output, shape index: {1}]   ;;  %s1075_s4 = inlined_call_operand.hbm [shape: f32[8,128], index: 4, kind: output, shape index: {2}]  }
   0x1   :  { %11 = vsyncpa [#allocation7], 0 }
   0x2   :  { %12 = vsyncpa [#allocation5], 0 }
   0x3   :  { %13 = vsyncpa [#allocation10], 0  ;;  %s986_s15 = smov [#allocation3]  }
   0x4   :  { %s19_s16 = sshll.u32 %s986_s15, 4  ;;  %s20_s16 = int_to_ptr.vmem [resolvable:$true] %s19_s16 }
   0x5   :  { %s886_s17 = scalar_lea.vmem %s20_s16, 2048  ;;  %p891_p1 = scmp.lt.s32.totalorder %s20_s16, %s20_s16 }
   0x6   :  { %p887_p0 = scmp.ne.s32.totalorder %s20_s16, %s886_s17  ;;  %p892_p2 = scmp.lt.s32.totalorder %s886_s17, %s886_s17 }
   0x8   :  { %p893_p3 = por %p892_p2, %p891_p1 }
   0xa   :  { %p894_p4 = pnand %p893_p3, %p887_p0 }
   0xc   :  { %897 = shalt.err (!%p894_p4)
}
   0xd   :  { %s987_s18 = smov 128   ;;  %s988_s19 = smov 8  }
   0xe   :  { %25 = dma.hbm_to_vmem [thread:$0]  %s1071_s0, 2048, %s20_s16, [#allocation4], %s987_s18, %s987_s18, %s988_s19  }
   0xf   :  { %s989_s22 = smov [#allocation6]  }
  0x10   :  { %s31_s23 = sshll.u32 %s989_s22, 4  ;;  %s32_s23 = int_to_ptr.vmem [resolvable:$true] %s31_s23 }
  0x11   :  { %s906_s24 = scalar_lea.vmem %s32_s23, 2048  ;;  %p911_p6 = scmp.lt.s32.totalorder %s32_s23, %s32_s23 }
  0x12   :  { %p907_p5 = scmp.ne.s32.totalorder %s32_s23, %s906_s24  ;;  %p912_p7 = scmp.lt.s32.totalorder %s906_s24, %s906_s24 }
  0x14   :  { %p913_p8 = por %p912_p7, %p911_p6 }
  0x16   :  { %p914_p9 = pnand %p913_p8, %p907_p5 }
  0x18   :  { %917 = shalt.err (!%p914_p9)
}
  0x19   :  { %s990_s25 = smov 64   ;;  %s991_s26 = smov 4  }
  0x1a   :  { %37 = dma.hbm_to_vmem [thread:$0]  %s1072_s1, 2048, %s32_s23, [#allocation7], %s990_s25, %s990_s25, %s991_s26  }
  0x1b   :  { %978 = dma.done.wait [#allocation4], 2048  }
  0x1c   :  { %979 = vsyncadd [#allocation4], 4294965248 }
  0x1d   :  { %980 = dma.done.wait [#allocation7], 2048  }
  0x1e   :  { %981 = vsyncadd [#allocation7], 4294965248  ;;  %v838_v0 = vld [vmem:[#allocation6 + $0x78] sm:$0xff]   ;;  %v840_v2 = vld [vmem:[#allocation6 + $0x70] sm:$0xff]   ;;  %s992_s0 = smov [#allocation8]  }
  0x1f   :  { %v839_v1 = vld [vmem:[#allocation6 + $0x38] sm:$0xff]   ;;  %749 = vmatprep.subr.bf16.mxu0 %v838_v0  ;;  %813 = vmatprep.subr.bf16.mxu1 %v838_v0  ;;  %v841_v3 = vld [vmem:[#allocation6 + $0x30] sm:$0xff]   ;;  %v842_v4 = vld [vmem:[#allocation6 + $0x68] sm:$0xff]   ;;  %s598_s1 = sshll.u32 %s992_s0, 4  ;;  %s599_s1 = int_to_ptr.vmem [resolvable:$true] %s598_s1 }
  0x20   :  { %750 = vmatpush3.bf16.msra.mxu0 %v839_v1  ;;  %821 = vmatpush3.bf16.msra.mxu1 %v839_v1  ;;  %v843_v5 = vld [vmem:[#allocation6 + $0x28] sm:$0xff]   ;;  %v844_v6 = vld [vmem:[#allocation6 + $0x60] sm:$0xff]   ;;  %v846_v8 = vld [vmem:[#allocation6 + $0x58] sm:$0xff]   ;;  %s918_s29 = scalar_lea.vmem %s599_s1, 1024  ;;  %p923_p11 = scmp.lt.s32.totalorder %s599_s1, %s599_s1 }
  0x21   :  { %751 = vmatprep.subr.bf16.mxu0 %v840_v2  ;;  %814 = vmatprep.subr.bf16.mxu1 %v840_v2  ;;  %v845_v7 = vld [vmem:[#allocation6 + $0x20] sm:$0xff]   ;;  %v847_v9 = vld [vmem:[#allocation6 + $0x18] sm:$0xff]   ;;  %v848_v10 = vld [vmem:[#allocation6 + $0x50] sm:$0xff]   ;;  %p919_p10 = scmp.ne.s32.totalorder %s599_s1, %s918_s29  ;;  %p924_p12 = scmp.lt.s32.totalorder %s918_s29, %s918_s29 }
  0x22   :  { %v856_v11 = vld [vmem:[#allocation3 + $0x4] ss:$8 sps:$4 sm:$0xff]   ;;  %v849_v12 = vld [vmem:[#allocation6 + $0x10] sm:$0xff]   ;;  %v854_v18 = vld [vmem:[#allocation3] ss:$8 sps:$4 sm:$0xff]  }
  0x23   :  { %v862_v13 = vld [vmem:[#allocation3 + $0x44] ss:$8 sps:$4 sm:$0xff]   ;;  %337 = vmatprep.mubr.bf16.mxu0 %v856_v11  ;;  %v860_v19 = vld [vmem:[#allocation3 + $0x40] ss:$8 sps:$4 sm:$0xff]   ;;  %v857_v20 = vld [vmem:[#allocation3 + $0x14] ss:$8 sps:$4 sm:$0xff]   ;;  %p925_p13 = por %p924_p12, %p923_p11 }
  0x24   :  { %752 = vmatpush3.bf16.msra.mxu0 %v841_v3  ;;  %822 = vmatpush3.bf16.msra.mxu1 %v841_v3  ;;  %v850_v14 = vld [vmem:[#allocation6 + $0x48] sm:$0xff]   ;;  %v852_v16 = vld [vmem:[#allocation6 + $0x40] sm:$0xff]   ;;  %v866_v21 = vld [vmem:[#allocation3 + $0x54] ss:$8 sps:$4 sm:$0xff]  }
  0x25   :  { %753 = vmatprep.subr.bf16.mxu0 %v842_v4  ;;  %815 = vmatprep.subr.bf16.mxu1 %v842_v4  ;;  %v851_v15 = vld [vmem:[#allocation6 + $0x8] sm:$0xff]   ;;  %v853_v17 = vld [vmem:[#allocation6] sm:$0xff]   ;;  %v859_v22 = vld [vmem:[#allocation3 + $0x10] ss:$8 sps:$4 sm:$0xff]   ;;  %p926_p0 = pnand %p925_p13, %p919_p10 }
  0x26   :  { %369 = vmatprep.mubr.bf16.mxu1 %v862_v13  ;;  %v868_v23 = vld [vmem:[#allocation3 + $0x50] ss:$8 sps:$4 sm:$0xff]   ;;  %v863_v24 = vld [vmem:[#allocation3 + $0x24] ss:$8 sps:$4 sm:$0xff]   ;;  %v865_v26 = vld [vmem:[#allocation3 + $0x20] ss:$8 sps:$4 sm:$0xff]  }
  0x27   :  { %v872_v25 = vld [vmem:[#allocation3 + $0x64] ss:$8 sps:$4 sm:$0xff]   ;;  %v874_v27 = vld [vmem:[#allocation3 + $0x60] ss:$8 sps:$4 sm:$0xff]   ;;  %v869_v28 = vld [vmem:[#allocation3 + $0x34] ss:$8 sps:$4 sm:$0xff]  }
  0x28   :  { %754 = vmatpush3.bf16.msra.mxu0 %v843_v5  ;;  %823 = vmatpush3.bf16.msra.mxu1 %v843_v5  ;;  %v875_v29 = vld [vmem:[#allocation3 + $0x74] ss:$8 sps:$4 sm:$0xff]   ;;  %v871_v30 = vld [vmem:[#allocation3 + $0x30] ss:$8 sps:$4 sm:$0xff]  }
  0x29   :  { %755 = vmatprep.subr.bf16.mxu0 %v844_v6  ;;  %816 = vmatprep.subr.bf16.mxu1 %v844_v6  ;;  %v877_v31 = vld [vmem:[#allocation3 + $0x70] ss:$8 sps:$4 sm:$0xff]  }
  0x2c   :  { %756 = vmatpush3.bf16.msra.mxu0 %v845_v7  ;;  %824 = vmatpush3.bf16.msra.mxu1 %v845_v7 }
  0x2d   :  { %757 = vmatprep.subr.bf16.mxu0 %v846_v8  ;;  %817 = vmatprep.subr.bf16.mxu1 %v846_v8 }
  0x30   :  { %758 = vmatpush3.bf16.msra.mxu0 %v847_v9  ;;  %825 = vmatpush3.bf16.msra.mxu1 %v847_v9 }
  0x31   :  { %759 = vmatprep.subr.bf16.mxu0 %v848_v10  ;;  %818 = vmatprep.subr.bf16.mxu1 %v848_v10 }
  0x34   :  { %760 = vmatpush3.bf16.msra.mxu0 %v849_v12  ;;  %826 = vmatpush3.bf16.msra.mxu1 %v849_v12 }
  0x35   :  { %761 = vmatprep.subr.bf16.mxu0 %v850_v14  ;;  %819 = vmatprep.subr.bf16.mxu1 %v850_v14 }
  0x38   :  { %762 = vmatpush3.bf16.msra.mxu0 %v851_v15  ;;  %827 = vmatpush3.bf16.msra.mxu1 %v851_v15 }
  0x39   :  { %763 = vmatprep.subr.bf16.mxu0 %v852_v16  ;;  %820 = vmatprep.subr.bf16.mxu1 %v852_v16 }
  0x3c   :  { %764 = vmatpush3.bf16.msra.mxu0 %v853_v17  ;;  %828 = vmatpush3.bf16.msra.mxu1 %v853_v17 }
  0x3f   :  { %338 = vmatmul.mubr.bf16.vlgmr.msra.gmra.mxu0 %v854_v18  ;;  %370 = vmatmul.mubr.bf16.vlgmr.msra.gmra.mxu1 %v860_v19 }
  0x40   :  { %345 = vmatprep.mubr.bf16.mxu0 %v857_v20  ;;  %377 = vmatprep.mubr.bf16.mxu1 %v866_v21 }
  0x47   :  { %346 = vmatmul.mubr.bf16.gmra.mxu0 %v859_v22  ;;  %378 = vmatmul.mubr.bf16.gmra.mxu1 %v868_v23 }
  0x48   :  { %353 = vmatprep.mubr.bf16.mxu0 %v863_v24  ;;  %385 = vmatprep.mubr.bf16.mxu1 %v872_v25 }
  0x4f   :  { %354 = vmatmul.mubr.bf16.gmra.mxu0 %v865_v26  ;;  %386 = vmatmul.mubr.bf16.gmra.mxu1 %v874_v27 }
  0x50   :  { %361 = vmatprep.mubr.bf16.mxu0 %v869_v28  ;;  %393 = vmatprep.mubr.bf16.mxu1 %v875_v29 }
  0x57   :  { %362 = vmatmul.mubr.bf16.gmra.mxu0 %v871_v30  ;;  %394 = vmatmul.mubr.bf16.gmra.mxu1 %v877_v31 }
  0xff   :  { %v765_v32 = vpop.f32.mrf.mxu0  ;;  %v789_v33 = vpop.f32.mrf.mxu1 }
 0x101   :  { %v766_v34 = vpop.f32.mrf.mxu0  ;;  %v790_v35 = vpop.f32.mrf.mxu1 }
 0x102   :  { %v1029_v38 = vadd.f32 %v790_v35, %v789_v33  ;;  %v767_v41 = vadd.f32 %v766_v34, %v765_v32 }
 0x103   :  { %v768_v36 = vpop.f32.mrf.mxu0  ;;  %v792_v37 = vpop.f32.mrf.mxu1 }
 0x104   :  { %v554_v1 = vmul.f32 %v767_v41, %v767_v41 }
 0x105   :  { %v769_v39 = vpop.f32.mrf.mxu0  ;;  %v793_v40 = vpop.f32.mrf.mxu1 }
 0x106   :  { %v770_v42 = vadd.f32 %v769_v39, %v768_v36  ;;  %v1031_v43 = vadd.f32 %v793_v40, %v792_v37 }
 0x107   :  { %v771_v44 = vpop.f32.mrf.mxu0  ;;  %v795_v45 = vpop.f32.mrf.mxu1 }
 0x108   :  { %v705_v46 = vpack.c.bf16 %v770_v42, %v767_v41  ;;  %v725_v47 = vpack.c.bf16 %v1031_v43, %v1029_v38  ;;  %v555_v62 = vmul.f32 %v770_v42, %v770_v42  ;;  %v533_v6 = vadd.f32 %v770_v42, %v767_v41 }
 0x109   :  { %v772_v48 = vpop.f32.mrf.mxu0  ;;  %v796_v49 = vpop.f32.mrf.mxu1 }
 0x10a   :  { %706 = vst [vmem:[#allocation8] sm:$0xff] %v705_v46   ;;  %745 = vst [vmem:[#allocation8 + $0x20] sm:$0xff] %v725_v47   ;;  %v1035_v52 = vadd.f32 %v796_v49, %v795_v45  ;;  %v773_v55 = vadd.f32 %v772_v48, %v771_v44  ;;  %v570_v8 = vadd.f32 %v555_v62, %v554_v1 }
 0x10b   :  { %v774_v50 = vpop.f32.mrf.mxu0  ;;  %v798_v51 = vpop.f32.mrf.mxu1  ;;  %v562_v47 = vmul.f32 %v1029_v38, %v1029_v38 }
 0x10c   :  { %v556_v2 = vmul.f32 %v773_v55, %v773_v55  ;;  %v534_v12 = vadd.f32 %v773_v55, %v533_v6 }
 0x10d   :  { %v775_v53 = vpop.f32.mrf.mxu0  ;;  %v799_v54 = vpop.f32.mrf.mxu1 }
 0x10e   :  { %v776_v56 = vadd.f32 %v775_v53, %v774_v50  ;;  %v1037_v57 = vadd.f32 %v799_v54, %v798_v51  ;;  %v571_v15 = vadd.f32 %v570_v8, %v556_v2 }
 0x10f   :  { %v777_v58 = vpop.f32.mrf.mxu0  ;;  %v801_v59 = vpop.f32.mrf.mxu1 }
 0x110   :  { %v710_v60 = vpack.c.bf16 %v776_v56, %v773_v55  ;;  %v730_v61 = vpack.c.bf16 %v1037_v57, %v1035_v52  ;;  %v557_v9 = vmul.f32 %v776_v56, %v776_v56  ;;  %v535_v19 = vadd.f32 %v776_v56, %v534_v12 }
 0x111   :  { %v778_v63 = vpop.f32.mrf.mxu0  ;;  %v802_v0 = vpop.f32.mrf.mxu1 }
 0x112   :  { %742 = vst [vmem:[#allocation8 + $0x8] sm:$0xff] %v710_v60   ;;  %746 = vst [vmem:[#allocation8 + $0x28] sm:$0xff] %v730_v61   ;;  %v779_v3 = vadd.f32 %v778_v63, %v777_v58  ;;  %v1041_v7 = vadd.f32 %v802_v0, %v801_v59  ;;  %v572_v22 = vadd.f32 %v571_v15, %v557_v9 }
 0x113   :  { %v780_v4 = vpop.f32.mrf.mxu0  ;;  %v804_v5 = vpop.f32.mrf.mxu1 }
 0x114   :  { %v558_v16 = vmul.f32 %v779_v3, %v779_v3  ;;  %v536_v26 = vadd.f32 %v779_v3, %v535_v19 }
 0x115   :  { %v781_v10 = vpop.f32.mrf.mxu0  ;;  %v805_v11 = vpop.f32.mrf.mxu1 }
 0x116   :  { %v782_v13 = vadd.f32 %v781_v10, %v780_v4  ;;  %v806_v14 = vadd.f32 %v805_v11, %v804_v5  ;;  %v573_v28 = vadd.f32 %v572_v22, %v558_v16 }
 0x117   :  { %v783_v17 = vpop.f32.mrf.mxu0  ;;  %v807_v18 = vpop.f32.mrf.mxu1 }
 0x118   :  { %v715_v20 = vpack.c.bf16 %v782_v13, %v779_v3  ;;  %v735_v21 = vpack.c.bf16 %v806_v14, %v1041_v7  ;;  %v559_v23 = vmul.f32 %v782_v13, %v782_v13  ;;  %v537_v31 = vadd.f32 %v782_v13, %v536_v26 }
 0x119   :  { %v784_v24 = vpop.f32.mrf.mxu0  ;;  %v808_v25 = vpop.f32.mrf.mxu1 }
 0x11a   :  { %743 = vst [vmem:[#allocation8 + $0x10] sm:$0xff] %v715_v20   ;;  %v785_v27 = vadd.f32 %v784_v24, %v783_v17  ;;  %747 = vst [vmem:[#allocation8 + $0x30] sm:$0xff] %v735_v21   ;;  %v809_v33 = vadd.f32 %v808_v25, %v807_v18  ;;  %v574_v34 = vadd.f32 %v573_v28, %v559_v23 }
 0x11b   :  { %v786_v29 = vpop.f32.mrf.mxu0  ;;  %v810_v30 = vpop.f32.mrf.mxu1 }
 0x11c   :  { %v560_v32 = vmul.f32 %v785_v27, %v785_v27  ;;  %v538_v37 = vadd.f32 %v785_v27, %v537_v31 }
 0x11d   :  { %v787_v35 = vpop.f32.mrf.mxu0  ;;  %v811_v36 = vpop.f32.mrf.mxu1 }
 0x11e   :  { %v788_v39 = vadd.f32 %v787_v35, %v786_v29  ;;  %v812_v40 = vadd.f32 %v811_v36, %v810_v30  ;;  %v575_v41 = vadd.f32 %v574_v34, %v560_v32 }
 0x120   :  { %v720_v42 = vpack.c.bf16 %v788_v39, %v785_v27  ;;  %v539_v44 = vadd.f32 %v788_v39, %v538_v37  ;;  %v561_v45 = vmul.f32 %v788_v39, %v788_v39  ;;  %v740_v46 = vpack.c.bf16 %v812_v40, %v809_v33 }
 0x122   :  { %744 = vst [vmem:[#allocation8 + $0x18] sm:$0xff] %v720_v42   ;;  %v540_v48 = vadd.f32 %v1029_v38, %v539_v44  ;;  %v576_v49 = vadd.f32 %v575_v41, %v561_v45  ;;  %748 = vst [vmem:[#allocation8 + $0x38] sm:$0xff] %v740_v46  }
 0x123   :  { %929 = shalt.err (!%p926_p0)
}
 0x124   :  { %604 = dma.vmem_to_hbm [thread:$0]  %s599_s1, 1024, %s1073_s2, [#allocation5], %s990_s25, %s990_s25, %s991_s26   ;;  %v563_v50 = vmul.f32 %v1031_v43, %v1031_v43  ;;  %v541_v38 = vadd.f32 %v1031_v43, %v540_v48  ;;  %v577_v51 = vadd.f32 %v576_v49, %v562_v47  ;;  %v564_v53 = vmul.f32 %v1035_v52, %v1035_v52 }
 0x125   :  { %v565_v56 = vmul.f32 %v1037_v57, %v1037_v57  ;;  %v566_v60 = vmul.f32 %v1041_v7, %v1041_v7  ;;  %v567_v63 = vmul.f32 %v806_v14, %v806_v14  ;;  %v568_v3 = vmul.f32 %v809_v33, %v809_v33  ;;  %s993_s2 = smov [#allocation9]   ;;  %s994_s7 = smov [#allocation11]  }
 0x126   :  { %v578_v54 = vadd.f32 %v577_v51, %v563_v50  ;;  %v542_v55 = vadd.f32 %v1035_v52, %v541_v38  ;;  %v569_v5 = vmul.f32 %v812_v40, %v812_v40  ;;  %s611_s6 = sshll.u32 %s993_s2, 4  ;;  %s621_s8 = sshll.u32 %s994_s7, 4  ;;  %s612_s6 = int_to_ptr.vmem [resolvable:$true] %s611_s6  ;;  %s622_s8 = int_to_ptr.vmem [resolvable:$true] %s621_s8 }
 0x127   :  { %s938_s9 = scalar_lea.vmem %s612_s6, 128  ;;  %p943_p2 = scmp.lt.s32.totalorder %s612_s6, %s612_s6 }
 0x128   :  { %v543_v58 = vadd.f32 %v1037_v57, %v542_v55  ;;  %v579_v59 = vadd.f32 %v578_v54, %v564_v53  ;;  %p939_p1 = scmp.ne.s32.totalorder %s612_s6, %s938_s9  ;;  %p944_p3 = scmp.lt.s32.totalorder %s938_s9, %s938_s9 }
 0x12a   :  { %v544_v61 = vadd.f32 %v1041_v7, %v543_v58  ;;  %v580_v62 = vadd.f32 %v579_v59, %v565_v56  ;;  %p945_p4 = por %p944_p3, %p943_p2 }
 0x12c   :  { %v545_v43 = vadd.f32 %v806_v14, %v544_v61  ;;  %v581_v0 = vadd.f32 %v580_v62, %v566_v60  ;;  %p946_p5 = pnand %p945_p4, %p939_p1 }
 0x12e   :  { %v582_v1 = vadd.f32 %v581_v0, %v567_v63  ;;  %v546_v2 = vadd.f32 %v809_v33, %v545_v43 }
 0x130   :  { %v583_v4 = vadd.f32 %v582_v1, %v568_v3  ;;  %v547_v52 = vadd.f32 %v812_v40, %v546_v2 }
 0x132   :  { %v548_v6 = vrot.slane %v547_v52, 4  ;;  %v584_v8 = vadd.f32 %v583_v4, %v569_v5 }
 0x134   :  { %v549_v9 = vadd.f32 %v548_v6, %v547_v52  ;;  %v585_v57 = vrot.slane %v584_v8, 4 }
 0x136   :  { %v586_v10 = vadd.f32 %v585_v57, %v584_v8  ;;  %v550_v11 = vrot.slane %v549_v9, 2 }
 0x138   :  { %v551_v12 = vadd.f32 %v550_v11, %v549_v9  ;;  %v587_v13 = vrot.slane %v586_v10, 2 }
 0x13a   :  { %v552_v7 = vrot.slane %v551_v12, 1  ;;  %v588_v15 = vadd.f32 %v587_v13, %v586_v10 }
 0x13c   :  { %v553_v14 = vadd.f32 %v552_v7, %v551_v12  ;;  %v589_v16 = vrot.slane %v588_v15, 1 }
 0x13e   :  { %591 = vst [vmem:[#allocation9] sm:$0xff] %v553_v14  ;;  %v590_v17 = vadd.f32 %v589_v16, %v588_v15 }
 0x13f   :  { %949 = shalt.err (!%p946_p5)
}
 0x140   :  { %614 = dma.vmem_to_hbm [thread:$0]  %s612_s6, 128, %s1074_s3, [#allocation10]   ;;  %592 = vst [vmem:[#allocation11] sm:$0xff] %v590_v17 }
 0x141   :  { %s958_s12 = scalar_lea.vmem %s622_s8, 128  ;;  %p963_p7 = scmp.lt.s32.totalorder %s622_s8, %s622_s8 }
 0x142   :  { %p959_p6 = scmp.ne.s32.totalorder %s622_s8, %s958_s12  ;;  %p964_p8 = scmp.lt.s32.totalorder %s958_s12, %s958_s12 }
 0x144   :  { %p965_p9 = por %p964_p8, %p963_p7 }
 0x146   :  { %p966_p10 = pnand %p965_p9, %p959_p6 }
 0x148   :  { %969 = shalt.err (!%p966_p10)
}
 0x149   :  { %624 = dma.vmem_to_hbm [thread:$0]  %s622_s8, 128, %s1075_s4, [#allocation10]  }
 0x14a   :  { %982 = dma.done.wait [#allocation5], 1024  }
 0x14b   :  { %983 = vsyncadd [#allocation5], 4294966272 }
 0x14c   :  { %984 = dma.done.wait [#allocation10], 256  }
 0x14d   :  { %985 = vsyncadd [#allocation10], 4294967040 }
 0x14e   :  { %634 = vsyncpa [#allocation4], 1 }
 0x14f   :  { %635 = vsyncpa [#allocation7], 1 }
 0x150   :  { %636 = vsyncpa [#allocation5], 1 }
 0x151   :  { %637 = vsyncpa [#allocation10], 1 }

</bundles_post_ra>
